<compile_context>
chip_gen: v7x
topology: tpu7x:2x2x1
jax: 0.10.0
libtpu: 0.0.40
codegen_flags: <defaults>
</compile_context>

<pallas_src>
import functools

import jax
import jax.numpy as jnp
from jax.experimental import pallas as pl
from jax.experimental.pallas import tpu as pltpu


# Padded / logical dims.
IN_DIM = 10
IN_PAD = 16          # sublane-friendly K for layer 1 (zero padded)
HIDDEN = 128
OUT_DIM = 7
OUT_PAD = 128        # lane-dense output width (zero padded)


def mlp_policy_kernel(x_ref, w1_ref, b1_ref, w2_ref, b2_ref, w3_ref, b3_ref,
                      o_ref):
    """Fused 3-layer MLP on one batch tile.

    x_ref: (tile_b, IN_PAD) bf16; weights bf16; biases f32; output f32.
    MXU runs in bf16 with f32 accumulation; bias + ReLU epilogue in f32.
    """
    x = x_ref[...]                                                   # bf16

    h1 = jnp.dot(x, w1_ref[...], preferred_element_type=jnp.float32)
    h1 = jnp.maximum(h1 + b1_ref[...], 0.0)                          # f32 ReLU

    h2 = jnp.dot(h1.astype(jnp.bfloat16), w2_ref[...],
                 preferred_element_type=jnp.float32)
    h2 = jnp.maximum(h2 + b2_ref[...], 0.0)                          # f32 ReLU

    out = jnp.dot(h2.astype(jnp.bfloat16), w3_ref[...],
                  preferred_element_type=jnp.float32)
    o_ref[...] = (out + b3_ref[...]).astype(o_ref.dtype)             # lane-dense store


def init_mlp_params(key, input_dim=IN_DIM, hidden_dim=HIDDEN, output_dim=OUT_DIM):
    """f32 master params, nn.Linear-style U(-1/sqrt(fan_in), 1/sqrt(fan_in)).

    Weights stored as (in_features, out_features) so y = x @ W + b.
    """
    ks = jax.random.split(key, 6)

    def linear(kw, kb, fan_in, fan_out):
        bound = 1.0 / jnp.sqrt(jnp.float32(fan_in))
        w = jax.random.uniform(kw, (fan_in, fan_out), jnp.float32, -bound, bound)
        b = jax.random.uniform(kb, (1, fan_out), jnp.float32, -bound, bound)
        return w, b

    w1, b1 = linear(ks[0], ks[1], input_dim, hidden_dim)
    w2, b2 = linear(ks[2], ks[3], hidden_dim, hidden_dim)
    w3, b3 = linear(ks[4], ks[5], hidden_dim, output_dim)
    return (w1, b1, w2, b2, w3, b3)


def pack_params(params):
    """Pad to TPU-friendly shapes and cast weights to bf16 (biases stay f32).

    Padding is zeros, so logical outputs (lanes 0..6) are unchanged.
    """
    w1, b1, w2, b2, w3, b3 = params
    in_dim, hidden = w1.shape
    out_dim = w3.shape[1]

    w1p = jnp.zeros((IN_PAD, hidden), jnp.float32).at[:in_dim, :].set(w1)
    w3p = jnp.zeros((hidden, OUT_PAD), jnp.float32).at[:, :out_dim].set(w3)
    b3p = jnp.zeros((1, OUT_PAD), jnp.float32).at[:, :out_dim].set(b3)

    return (w1p.astype(jnp.bfloat16),
            b1.astype(jnp.float32),
            w2.astype(jnp.bfloat16),
            b2.astype(jnp.float32),
            w3p.astype(jnp.bfloat16),
            b3p.astype(jnp.float32))


def _round_up(n, m):
    return ((n + m - 1) // m) * m


@functools.partial(jax.jit, static_argnames=("block_b",))
def mlp_policy_forward(x, packed_params, *, block_b=None):
    """Run the fused MLP kernel.  x: (B, IN_DIM) float32 -> (B, OUT_DIM) f32."""
    w1, b1, w2, b2, w3, b3 = packed_params
    B = x.shape[0]

    # Batch tile: multiple of 8 sublanes; default amortizes up to 128 rows/step.
    if block_b is None:
        block_b = min(128, _round_up(B, 8))
    block_b = _round_up(block_b, 8)
    Bp = _round_up(max(B, block_b), block_b)

    # Zero-pad batch rows and the K dim (10 -> 16); cast activations to bf16.
    xp = jnp.zeros((Bp, IN_PAD), jnp.float32).at[:B, :IN_DIM].set(x)
    xp = xp.astype(jnp.bfloat16)

    grid = (Bp // block_b,)

    flops = 2 * Bp * (IN_PAD * HIDDEN + HIDDEN * HIDDEN + HIDDEN * OUT_PAD)
    bytes_accessed = (xp.size * 2
                      + (w1.size + w2.size + w3.size) * 2
                      + (b1.size + b2.size + b3.size) * 4
                      + Bp * OUT_PAD * 4)

    out_padded = pl.pallas_call(
        mlp_policy_kernel,
        out_shape=jax.ShapeDtypeStruct((Bp, OUT_PAD), jnp.float32),
        grid_spec=pltpu.PrefetchScalarGridSpec(
            num_scalar_prefetch=0,
            grid=grid,
            in_specs=[
                pl.BlockSpec((block_b, IN_PAD), lambda i: (i, 0)),   # x tile
                pl.BlockSpec((IN_PAD, HIDDEN), lambda i: (0, 0)),    # W1 (resident)
                pl.BlockSpec((1, HIDDEN), lambda i: (0, 0)),         # b1
                pl.BlockSpec((HIDDEN, HIDDEN), lambda i: (0, 0)),    # W2
                pl.BlockSpec((1, HIDDEN), lambda i: (0, 0)),         # b2
                pl.BlockSpec((HIDDEN, OUT_PAD), lambda i: (0, 0)),   # W3 (padded)
                pl.BlockSpec((1, OUT_PAD), lambda i: (0, 0)),        # b3 (padded)
            ],
            out_specs=pl.BlockSpec((block_b, OUT_PAD), lambda i: (i, 0)),
        ),
        compiler_params=pltpu.CompilerParams(
            dimension_semantics=("parallel",)),
        cost_estimate=pl.CostEstimate(
            flops=flops, transcendentals=0, bytes_accessed=bytes_accessed),
    )(xp, w1, b1, w2, b2, w3, b3)

    return out_padded[:B, :OUT_DIM]


def mlp_policy_reference_bf16(x, packed_params):
    """JAX reference doing the same bf16-MXU / f32-accumulate math (padded)."""
    w1, b1, w2, b2, w3, b3 = packed_params
    B = x.shape[0]
    xp = jnp.zeros((B, IN_PAD), jnp.float32).at[:, :IN_DIM].set(x)
    xp = xp.astype(jnp.bfloat16)
    h1 = jnp.maximum(jnp.dot(xp, w1, preferred_element_type=jnp.float32) + b1, 0.0)
    h2 = jnp.maximum(jnp.dot(h1.astype(jnp.bfloat16), w2,
                             preferred_element_type=jnp.float32) + b2, 0.0)
    out = jnp.dot(h2.astype(jnp.bfloat16), w3,
                  preferred_element_type=jnp.float32) + b3
    return out[:, :OUT_DIM]


def mlp_policy_reference_f32(x, params):
    """Plain f32 reference matching the PyTorch module exactly."""
    w1, b1, w2, b2, w3, b3 = params
    h1 = jnp.maximum(x @ w1 + b1, 0.0)
    h2 = jnp.maximum(h1 @ w2 + b2, 0.0)
    return h2 @ w3 + b3


if __name__ == "__main__":
    key = jax.random.PRNGKey(0)
    k_params, k_x = jax.random.split(key)

    batch = 32
    params = init_mlp_params(k_params, IN_DIM, HIDDEN, OUT_DIM)
    packed = pack_params(params)
    x = jax.random.normal(k_x, (batch, IN_DIM), jnp.float32)

    # Small block_b so the example exercises a multi-step batch grid with
    # VMEM-resident weights; use the default (128) for real workloads.
    out = mlp_policy_forward(x, packed, block_b=8)
    out = jax.block_until_ready(out)
    assert out.shape == (batch, OUT_DIM), out.shape

    # Kernel vs. identical bf16/f32-accumulate JAX math: should match tightly.
    ref_bf16 = mlp_policy_reference_bf16(x, packed)
    assert jnp.allclose(out, ref_bf16, atol=1e-3, rtol=1e-3), "mismatch vs bf16 reference"

    # Kernel vs. full-f32 PyTorch-equivalent math: loose tolerance for bf16 inputs.
    ref_f32 = mlp_policy_reference_f32(x, params)
    assert jnp.allclose(out, ref_f32, atol=1e-1, rtol=5e-2), "mismatch vs f32 reference"

    print("KERNEL_OK")
</pallas_src>

<mosaic_0001>
module attributes {stable_mosaic.version = 11 : i64} {
  func.func @mlp_policy_kernel(%arg0: i32, %arg1: memref<8x16xbf16, #tpu.memory_space<vmem>>, %arg2: memref<16x128xbf16, #tpu.memory_space<vmem>>, %arg3: memref<1x128xf32, #tpu.memory_space<vmem>>, %arg4: memref<128x128xbf16, #tpu.memory_space<vmem>>, %arg5: memref<1x128xf32, #tpu.memory_space<vmem>>, %arg6: memref<128x128xbf16, #tpu.memory_space<vmem>>, %arg7: memref<1x128xf32, #tpu.memory_space<vmem>>, %arg8: memref<8x128xf32, #tpu.memory_space<vmem>>) attributes {dimension_semantics = [#tpu.dimension_semantics<parallel>], iteration_bounds = array<i64: 4>, scalar_prefetch = 0 : i64, scratch_operands = 0 : i64, tpu.core_type = #tpu.core_type<tc>, window_params = [{transform_indices = @transform_0, window_bounds = array<i64: 8, 16>}, {pipeline_mode = #tpu.pipeline_mode<synchronous>, transform_indices = @transform_1, window_bounds = array<i64: 16, 128>}, {pipeline_mode = #tpu.pipeline_mode<synchronous>, transform_indices = @transform_2, window_bounds = array<i64: 1, 128>}, {pipeline_mode = #tpu.pipeline_mode<synchronous>, transform_indices = @transform_3, window_bounds = array<i64: 128, 128>}, {pipeline_mode = #tpu.pipeline_mode<synchronous>, transform_indices = @transform_4, window_bounds = array<i64: 1, 128>}, {pipeline_mode = #tpu.pipeline_mode<synchronous>, transform_indices = @transform_5, window_bounds = array<i64: 128, 128>}, {pipeline_mode = #tpu.pipeline_mode<synchronous>, transform_indices = @transform_6, window_bounds = array<i64: 1, 128>}, {transform_indices = @transform_7, window_bounds = array<i64: 8, 128>}]} {
    %c0 = arith.constant 0 : index
    %c0_0 = arith.constant 0 : index
    %0 = vector.load %arg1[%c0, %c0_0] : memref<8x16xbf16, #tpu.memory_space<vmem>>, vector<8x16xbf16>
    %c0_1 = arith.constant 0 : index
    %c0_2 = arith.constant 0 : index
    %1 = vector.load %arg2[%c0_1, %c0_2] : memref<16x128xbf16, #tpu.memory_space<vmem>>, vector<16x128xbf16>
    %cst = arith.constant dense<0.000000e+00> : vector<8x128xf32>
    %2 = tpu.matmul %0, %1, %cst {dimension_numbers = #tpu.dot_dimension_numbers<[1], [0], [0], [1], [0, 0, 1, 1], [], []>} : vector<8x16xbf16>, vector<16x128xbf16>, vector<8x128xf32> -> vector<8x128xf32>
    %c0_3 = arith.constant 0 : index
    %c0_4 = arith.constant 0 : index
    %3 = vector.load %arg3[%c0_3, %c0_4] : memref<1x128xf32, #tpu.memory_space<vmem>>, vector<1x128xf32>
    %4 = vector.broadcast %3 : vector<1x128xf32> to vector<8x128xf32>
    %5 = arith.addf %2, %4 : vector<8x128xf32>
    %cst_5 = arith.constant 0.000000e+00 : f32
    %6 = vector.broadcast %cst_5 : f32 to vector<8x128xf32>
    %7 = arith.maximumf %5, %6 : vector<8x128xf32>
    %8 = arith.truncf %7 : vector<8x128xf32> to vector<8x128xbf16>
    %c0_6 = arith.constant 0 : index
    %c0_7 = arith.constant 0 : index
    %9 = vector.load %arg4[%c0_6, %c0_7] : memref<128x128xbf16, #tpu.memory_space<vmem>>, vector<128x128xbf16>
    %cst_8 = arith.constant dense<0.000000e+00> : vector<8x128xf32>
    %10 = tpu.matmul %8, %9, %cst_8 {dimension_numbers = #tpu.dot_dimension_numbers<[1], [0], [0], [1], [0, 0, 1, 1], [], []>} : vector<8x128xbf16>, vector<128x128xbf16>, vector<8x128xf32> -> vector<8x128xf32>
    %c0_9 = arith.constant 0 : index
    %c0_10 = arith.constant 0 : index
    %11 = vector.load %arg5[%c0_9, %c0_10] : memref<1x128xf32, #tpu.memory_space<vmem>>, vector<1x128xf32>
    %12 = vector.broadcast %11 : vector<1x128xf32> to vector<8x128xf32>
    %13 = arith.addf %10, %12 : vector<8x128xf32>
    %cst_11 = arith.constant 0.000000e+00 : f32
    %14 = vector.broadcast %cst_11 : f32 to vector<8x128xf32>
    %15 = arith.maximumf %13, %14 : vector<8x128xf32>
    %16 = arith.truncf %15 : vector<8x128xf32> to vector<8x128xbf16>
    %c0_12 = arith.constant 0 : index
    %c0_13 = arith.constant 0 : index
    %17 = vector.load %arg6[%c0_12, %c0_13] : memref<128x128xbf16, #tpu.memory_space<vmem>>, vector<128x128xbf16>
    %cst_14 = arith.constant dense<0.000000e+00> : vector<8x128xf32>
    %18 = tpu.matmul %16, %17, %cst_14 {dimension_numbers = #tpu.dot_dimension_numbers<[1], [0], [0], [1], [0, 0, 1, 1], [], []>} : vector<8x128xbf16>, vector<128x128xbf16>, vector<8x128xf32> -> vector<8x128xf32>
    %c0_15 = arith.constant 0 : index
    %c0_16 = arith.constant 0 : index
    %19 = vector.load %arg7[%c0_15, %c0_16] : memref<1x128xf32, #tpu.memory_space<vmem>>, vector<1x128xf32>
    %20 = vector.broadcast %19 : vector<1x128xf32> to vector<8x128xf32>
    %21 = arith.addf %18, %20 : vector<8x128xf32>
    %c0_17 = arith.constant 0 : index
    %c0_18 = arith.constant 0 : index
    %22 = vector.load %arg8[%c0_17, %c0_18] : memref<8x128xf32, #tpu.memory_space<vmem>>, vector<8x128xf32>
    tpu.vector_store %arg8[%c0_17, %c0_18], %21 {strides = array<i32>} : memref<8x128xf32, #tpu.memory_space<vmem>>, vector<8x128xf32>,
    return
  }
  func.func @transform_0(%arg0: i32) -> (i32, i32) {
    %c0_i32 = arith.constant 0 : i32
    %c0_i32_0 = arith.constant 0 : i32
    return %arg0, %c0_i32 : i32, i32
  }
  func.func @transform_1(%arg0: i32) -> (i32, i32) {
    %c0_i32 = arith.constant 0 : i32
    %c0_i32_0 = arith.constant 0 : i32
    %c0_i32_1 = arith.constant 0 : i32
    return %c0_i32, %c0_i32_0 : i32, i32
  }
  func.func @transform_2(%arg0: i32) -> (i32, i32) {
    %c0_i32 = arith.constant 0 : i32
    %c0_i32_0 = arith.constant 0 : i32
    %c0_i32_1 = arith.constant 0 : i32
    return %c0_i32, %c0_i32_0 : i32, i32
  }
  func.func @transform_3(%arg0: i32) -> (i32, i32) {
    %c0_i32 = arith.constant 0 : i32
    %c0_i32_0 = arith.constant 0 : i32
    %c0_i32_1 = arith.constant 0 : i32
    return %c0_i32, %c0_i32_0 : i32, i32
  }
  func.func @transform_4(%arg0: i32) -> (i32, i32) {
    %c0_i32 = arith.constant 0 : i32
    %c0_i32_0 = arith.constant 0 : i32
    %c0_i32_1 = arith.constant 0 : i32
    return %c0_i32, %c0_i32_0 : i32, i32
  }
  func.func @transform_5(%arg0: i32) -> (i32, i32) {
    %c0_i32 = arith.constant 0 : i32
    %c0_i32_0 = arith.constant 0 : i32
    %c0_i32_1 = arith.constant 0 : i32
    return %c0_i32, %c0_i32_0 : i32, i32
  }
  func.func @transform_6(%arg0: i32) -> (i32, i32) {
    %c0_i32 = arith.constant 0 : i32
    %c0_i32_0 = arith.constant 0 : i32
    %c0_i32_1 = arith.constant 0 : i32
    return %c0_i32, %c0_i32_0 : i32, i32
  }
  func.func @transform_7(%arg0: i32) -> (i32, i32) {
    %c0_i32 = arith.constant 0 : i32
    %c0_i32_0 = arith.constant 0 : i32
    return %arg0, %c0_i32 : i32, i32
  }
}

</mosaic_0001>

<bundles_post_ra>
// kernel: mlp_policy_forward.1
= control target key start
LH: loop header
LB: loop body
LE: loop exit
PB: predicated region body
PF: predicated region fallthrough
CT: control target
= control target key end

     0   :  { %12 = vsyncpa [#allocation3], 0  ;;  %s865_s24 = smov 0   ;;  %s984_s0 = inlined_call_operand.vmem [shape: bf16[32,16], index: 0, kind: input, shape index: {}]   ;;  %s985_s1 = inlined_call_operand.vmem [shape: bf16[16,128], index: 1, kind: input, shape index: {}]   ;;  %s986_s2 = inlined_call_operand.vmem [shape: f32[1,128], index: 2, kind: input, shape index: {}]   ;;  %s987_s3 = inlined_call_operand.vmem [shape: bf16[128,128], index: 3, kind: input, shape index: {}]   ;;  %s988_s4 = inlined_call_operand.vmem [shape: f32[1,128], index: 4, kind: input, shape index: {}]   ;;  %s989_s5 = inlined_call_operand.hbm [shape: bf16[128,128], index: 5, kind: input, shape index: {}]   ;;  %s990_s6 = inlined_call_operand.vmem [shape: f32[1,128], index: 6, kind: input, shape index: {}]   ;;  %s991_s7 = inlined_call_operand.vmem [shape: f32[32,128], index: 7, kind: output, shape index: {}]  }
   0x1 LB: > { %s871_s25 = sadd.s32 4294967295, %s818_s24   ;;  %p644_p0 = scmp.ge.s32.totalorder %s818_s24, 1  ;;  %s818_s24 = sphi %s865_s24, %s18_s24  }
   0x2   : > { %p201_p1 = scmp.lt.s32.totalorder %s818_s24, 5  ;;  %s820_s26 = smov [#allocation2]  }
   0x3   : > { %s225_s27 = sshll.u32 %s820_s26, 4  ;;  %p992_p3 = scmp.eq.s32.totalorder %s871_s25, 0  ;;  %s226_s27 = int_to_ptr.vmem [resolvable:$true] %s225_s27 }
   0x4   : > { %p875_p2 = pnand %p644_p0, %p201_p1  ;;  %s780_s9 = scalar_lea.hbm %s989_s5, 1024 }
   0x5   : > { %p781_p6 = scmp.ne.s32.totalorder %s989_s5, %s780_s9  ;;  %p787_p10 = scmp.lt.u32.totalorder %s780_s9, %s989_s5 }
   0x6   : > { %s994_s28 = scalar_select %p875_p2, 1, 0 }
   0x7   : > { %p744_p4 = pneg %p875_p2 }
   0x9   : > { %p884_p5 = pnand %p992_p3, %p744_p4 }
   0xb   : > { %p782_p7 = pneg %p884_p5 }
   0xd   : > { %p783_p8 = pnand %p782_p7, %p781_p6 }
   0xf   : > { %p784_p9 = pneg %p783_p8 }
  0x11   : > { %p789_p11 = pnand %p787_p10, %p784_p9 }
  0x13   : > { %792 = shalt.err (!%p789_p11)
}
  0x14   : > { %s793_s14 = scalar_lea.vmem %s226_s27, 1024  ;;  %p801_p1 = scmp.lt.s32.totalorder %s226_s27, %s226_s27 }
  0x15   : > { %p794_p12 = scmp.ne.s32.totalorder %s226_s27, %s793_s14  ;;  %p802_p4 = scmp.lt.s32.totalorder %s793_s14, %s793_s14 }
  0x17   : > { %p796_p13 = pnand %p794_p12, %p782_p7  ;;  %p803_p3 = por %p802_p4, %p801_p1 }
  0x19   : > { %p797_p0 = pneg %p796_p13 }
  0x1b   : > { %p804_p2 = pnand %p803_p3, %p797_p0 }
  0x1d   : > { %807 = shalt.err (!%p804_p2)
}
  0x1e   : > { %s821_s15 = smov 64   ;;  %s822_s16 = smov 4  }
  0x1f   : > { %747 = dma.hbm_to_vmem [thread:$0]  (!%p884_p5), %s989_s5, 1024, %s226_s27, [#allocation3], %s821_s15, %s821_s15, %s822_s16  }
  0x20   : > { %p996_p6 = scmp.ne.s32.totalorder %s994_s28, 0 }
  0x21   : > { %p997_p8 = scmp.eq.s32.totalorder (!%p996_p6), %s871_s25, 0 }
  0x22   : > { %251 = sbr.rel (%p996_p6) target bundleno = 699 (0x2bb), region = 48 }
  0x29   : > { %813 = dma.done.wait (%p997_p8), [#allocation3], 1024   ;;  %p998_p7 = pmov %p997_p8 }
  0x2a   : > { %p281_p2 = scmp.lt.s32.totalorder %s871_s25, 3  ;;  %v823_v0 = vmov 0.0   ;;  %vm824_vm0 = vmmov 0   ;;  %v763_v1 = vld [vmem:[%s985_s1] sm:$0xff]   ;;  %vm306_vm1 = vcmask 130048   ;;  %v765_v4 = vld [vmem:[%s987_s3 + $0x8] sm:$0xff]  }
  0x2b   : > { %815 = vsyncadd (%p998_p7), [#allocation3], 4294966272  ;;  %694 = vmatprep.subr.bf16.mxu0 %v823_v0  ;;  %696 = vmatprep.mubr.msk.bf16.mxu0 %vm824_vm0, %v823_v0  ;;  %v764_v3 = vld [vmem:[%s987_s3] sm:$0xff]   ;;  %v766_v5 = vld [vmem:[%s987_s3 + $0x10] sm:$0xff]  }
  0x2c   : > { %s1000_s25 = smov (!%p281_p2, %s871_s25), 3  ;;  %700 = vmatprep.subr.bf16.mxu1 %v823_v0  ;;  %716 = vmatprep.mubr.msk.bf16.mxu1 %vm824_vm0, %v823_v0  ;;  %v767_v6 = vld [vmem:[%s987_s3 + $0x18] sm:$0xff]   ;;  %v768_v7 = vld [vmem:[%s987_s3 + $0x20] sm:$0xff]   ;;  %v769_v8 = vld [vmem:[%s987_s3 + $0x28] sm:$0xff]  }
  0x2d   : > { %s649_s19 = sshll.u32 %s1000_s25, 2  ;;  %695 = vmatpush3.bf16.msra.mxu0 %v763_v1  ;;  %701 = vmatpush3.bf16.msra.mxu1 %v764_v3  ;;  %v770_v9 = vld [vmem:[%s987_s3 + $0x30] sm:$0xff]   ;;  %v771_v10 = vld [vmem:[%s987_s3 + $0x38] sm:$0xff]   ;;  %v772_v11 = vld [vmem:[#allocation2] sm:$0xff]   ;;  %s650_s26 = sshll.u32 %s1000_s25, 3 }
  0x2e   : > { %s284_s22 = scalar_lea.vmem %s984_s0, %s649_s19  ;;  %720 = vmatprep.subr.bf16.mxu0 %v823_v0  ;;  %702 = vmatprep.subr.bf16.mxu1 %v823_v0  ;;  %v773_v12 = vld [vmem:[#allocation2 + $0x8] sm:$0xff]   ;;  %v774_v13 = vld [vmem:[#allocation2 + $0x10] sm:$0xff]   ;;  %v775_v14 = vld [vmem:[#allocation2 + $0x18] sm:$0xff]   ;;  %s288_s8 = scalar_lea.vmem %s991_s7, %s650_s26 }
  0x2f   : > { %v290_v2 = vld [vmem:[%s284_s22] sm:$0xf]  ;;  %v777_v16 = vld [vmem:[#allocation2 + $0x28] sm:$0xff]   ;;  %v778_v25 = vld [vmem:[#allocation2 + $0x30] sm:$0xff]  }
  0x30   : > { %697 = vmatmul.mubr.msk.bf16.vlgmr.msra.gmra.mrb[0].mxu0 %vm306_vm1, %v290_v2  ;;  %v776_v15 = vld [vmem:[#allocation2 + $0x20] sm:$0xff]   ;;  %v779_v26 = vld [vmem:[#allocation2 + $0x38] sm:$0xff]  }
  0x31   : > { %736 = vmatprep.mubr.msk.bf16.mxu0 %vm824_vm0, %v823_v0  ;;  %703 = vmatpush3.bf16.msra.mxu1 %v765_v4  ;;  %v651_v17 = vld [vmem:[%s986_s2] ss:$0 sm:$0xff] }
  0x32   : > { %704 = vmatprep.subr.bf16.mxu1 %v823_v0  ;;  %721 = vmatpush3.bf16.msra.mxu0 %v772_v11  ;;  %v654_v27 = vld [vmem:[%s988_s4] ss:$0 sm:$0xff] }
  0x33   : > { %722 = vmatprep.subr.bf16.mxu0 %v823_v0  ;;  %v663_v35 = vld [vmem:[%s990_s6] ss:$0 sm:$0xff] }
  0x35   : > { %705 = vmatpush3.bf16.msra.mxu1 %v766_v5 }
  0x36   : > { %706 = vmatprep.subr.bf16.mxu1 %v823_v0  ;;  %723 = vmatpush3.bf16.msra.mxu0 %v773_v12 }
  0x37   : > { %724 = vmatprep.subr.bf16.mxu0 %v823_v0 }
  0x39   : > { %707 = vmatpush3.bf16.msra.mxu1 %v767_v6 }
  0x3a   : > { %708 = vmatprep.subr.bf16.mxu1 %v823_v0  ;;  %725 = vmatpush3.bf16.msra.mxu0 %v774_v13 }
  0x3b   : > { %726 = vmatprep.subr.bf16.mxu0 %v823_v0 }
  0x3d   : > { %709 = vmatpush3.bf16.msra.mxu1 %v768_v7 }
  0x3e   : > { %710 = vmatprep.subr.bf16.mxu1 %v823_v0  ;;  %727 = vmatpush3.bf16.msra.mxu0 %v775_v14 }
  0x3f   : > { %728 = vmatprep.subr.bf16.mxu0 %v823_v0 }
  0x41   : > { %711 = vmatpush3.bf16.msra.mxu1 %v769_v8 }
  0x42   : > { %712 = vmatprep.subr.bf16.mxu1 %v823_v0  ;;  %729 = vmatpush3.bf16.msra.mxu0 %v776_v15 }
  0x43   : > { %730 = vmatprep.subr.bf16.mxu0 %v823_v0 }
  0x45   : > { %713 = vmatpush3.bf16.msra.mxu1 %v770_v9 }
  0x46   : > { %714 = vmatprep.subr.bf16.mxu1 %v823_v0  ;;  %731 = vmatpush3.bf16.msra.mxu0 %v777_v16 }
  0x47   : > { %732 = vmatprep.subr.bf16.mxu0 %v823_v0 }
  0x49   : > { %715 = vmatpush3.bf16.msra.mxu1 %v771_v10 }
  0x4a   : > { %733 = vmatpush3.bf16.msra.mxu0 %v778_v25 }
  0x4b   : > { %734 = vmatprep.subr.bf16.mxu0 %v823_v0 }
  0x4e   : > { %735 = vmatpush3.bf16.msra.mxu0 %v779_v26 }
 0x103   : > { %v344_v18 = vpop.f32.mrb[0].mxu0 }
 0x104   : > { %v345_v19 = vadd.f32 %v651_v17, %v344_v18  ;;  %v698_v20 = vpop.f32.mrb[1].mxu0 }
 0x105   : > { %v347_v21 = vpop.f32.mrb[2].mxu0 }
 0x106   : > { %v350_v22 = vmax.f32 %v345_v19, 0.0  ;;  %v699_v23 = vpop.f32.mrb[3].mxu0 }
 0x108   : > { %v351_v24 = vpack.c.bf16 %v350_v22, %v350_v22 }
 0x10a   : > { %717 = vmatmul.mubr.bf16.vlgmr.msra.gmra.mrb[0].mxu1 %v351_v24 }
 0x1dd   : > { %v457_v28 = vpop.f32.mrb[0].mxu1 }
 0x1de   : > { %v458_v29 = vadd.f32 %v654_v27, %v457_v28  ;;  %v718_v30 = vpop.f32.mrb[1].mxu1 }
 0x1df   : > { %v460_v31 = vpop.f32.mrb[2].mxu1 }
 0x1e0   : > { %v463_v32 = vmax.f32 %v458_v29, 0.0  ;;  %v719_v33 = vpop.f32.mrb[3].mxu1 }
 0x1e2   : > { %v464_v34 = vpack.c.bf16 %v463_v32, %v463_v32 }
 0x1e4   : > { %737 = vmatmul.mubr.bf16.vlgmr.msra.gmra.mrb[4].mxu0 %v464_v34 }
 0x2b7   : > { %v570_v36 = vpop.f32.mrb[4].mxu0 }
 0x2b8   : > { %v571_v37 = vadd.f32 %v663_v35, %v570_v36  ;;  %v738_v38 = vpop.f32.mrb[5].mxu0 }
 0x2b9   : > { %v573_v39 = vpop.f32.mrb[6].mxu0 }
 0x2ba   : > { %576 = vst [vmem:[%s288_s8] sm:$0xff] %v571_v37  ;;  %v739_v40 = vpop.f32.mrb[7].mxu0 }
 0x2bb PF: > { %s18_s24 = sadd.s32 1, %s818_s24  }
 0x2bc   : > { %p15_p3 = scmp.ge.s32.totalorder %s18_s24, 6  }
 0x2be   :  { %17 = sbr.rel (!%p15_p3) target bundleno = 1 (0x1), region = 83 }
 0x2c5   :  { %596 = vsyncpa [#allocation3], 1 }
 0x2c6   :  { %598 = vsyncpa [#allocation3 + $0x1], 1 }

</bundles_post_ra>
